<compile_context>
chip_gen: v5e
topology: v5e:2x2
jax: 0.10.0
libtpu: 0.0.40
codegen_flags: <defaults>
</compile_context>

<pallas_src>
import functools

import jax
import jax.numpy as jnp
from jax import lax
from jax.experimental import pallas as pl
from jax.experimental.pallas import tpu as pltpu

_K_PAD = 128  # padded one-hot width: sum(vocab) (=65) <= 128 lanes


def _round_up(n, m):
    return ((n + m - 1) // m) * m


def _cdiv(a, b):
    return -(-a // b)


def _cat_specs(vocabs):
    """(x_column, lane_offset_in_onehot, vocab, shift_month) per category.

    Lane offsets follow the output concat order (county, business, product,
    month, weekday, hour); x columns are where each code lives in the input.
    """
    cols = (2, 3, 4, 7, 9, 8)           # county, business, product, month, weekday, hour
    shifts = (False, False, False, True, False, False)
    specs = []
    off = 0
    for col, vocab, shift in zip(cols, vocabs, shifts):
        specs.append((col, off, vocab, shift))
        off += vocab
    return tuple(specs)


def _build_rhs(tables, k_pad):
    """Fused (k_pad, sum_dims) matrix: the six embedding tables block-diagonal.
    No identity rows — passthrough columns never touch the MXU."""
    sum_dims = sum(t.shape[1] for t in tables)
    rhs = jnp.zeros((k_pad, sum_dims), jnp.float32)
    row = col = 0
    for t in tables:
        vocab, dim = t.shape
        rhs = rhs.at[row:row + vocab, col:col + dim].set(t.astype(jnp.float32))
        row += vocab
        col += dim
    return rhs


def embedder_kernel(x_ref, rhs_ref, out_ref, *, feat, n_pass, cat_specs):
    x = x_ref[...]                                        # (TILE_N, F) f32
    k = rhs_ref.shape[0]                                  # 128

    # Single-vreg lane iota, broadcast against (TILE_N, 1) targets below.
    lane = lax.broadcasted_iota(jnp.int32, (1, k), 1)

    # Combined one-hot over lanes [0, sum(vocab)); remaining lanes stay 0.
    onehot = None
    for col, off, vocab, shift in cat_specs:
        idx = x[:, col:col + 1].astype(jnp.int32)         # (TILE_N, 1)
        if shift:
            idx = jnp.maximum(idx - 1, 0)                 # torch.relu(month - 1)
        idx = jnp.clip(idx, 0, vocab - 1)                 # keep inside this block
        hit = lane == (idx + off)                         # (TILE_N, 128)
        onehot = hit if onehot is None else jnp.logical_or(onehot, hit)
    onehot = onehot.astype(jnp.float32)

    # One MXU matmul gathers all six embeddings: exact 0/1 one-hot x tables only.
    emb = jnp.dot(onehot, rhs_ref[...], preferred_element_type=jnp.float32)

    # Passthrough columns bypass the MXU entirely (masked stores; vst has slack).
    out_ref[:, 0:2] = x[:, 0:2]
    if n_pass > 2:
        out_ref[:, 2:n_pass] = x[:, 10:feat]
    out_ref[:, n_pass:] = emb


def embedder_forward(inputs, tables, *, tile_n=4096):
    """inputs: (B, S, F) float32; tables: 6 x (vocab, dim) float32 arrays in the
    order (county, business, product, month, weekday, hour)."""
    B, S, F = inputs.shape
    vocabs = [t.shape[0] for t in tables]
    dims = [t.shape[1] for t in tables]
    assert sum(vocabs) <= _K_PAD, "fused one-hot does not fit in 128 lanes"
    n_pass = 2 + (F - 10)
    sum_dims = sum(dims)
    out_dim = n_pass + sum_dims

    N = B * S
    n_rows8 = _round_up(max(N, 1), 8)
    tile_n = max(8, min(tile_n, n_rows8))
    steps = max(1, _cdiv(n_rows8, tile_n))
    if n_rows8 >= 16:
        # >= 2 grid steps and an even count so v7x's two TensorCores stay busy
        # and balanced (no effect on single-TC v5e/v6e).
        steps = max(steps, 2)
        if steps % 2:
            steps += 1
    tile_n = _round_up(_cdiv(N, steps), 8)
    n_pad = steps * tile_n

    x = inputs.reshape(N, F).astype(jnp.float32)
    if n_pad != N:
        # Padded tail rows are zeros -> clamped code-0 lookups, sliced off below.
        x = jnp.concatenate([x, jnp.zeros((n_pad - N, F), jnp.float32)], axis=0)

    rhs = _build_rhs(tables, _K_PAD)
    kernel = functools.partial(
        embedder_kernel, feat=F, n_pass=n_pass, cat_specs=_cat_specs(vocabs))

    # VMEM budget: lane-padded (tile_n, 128) f32 buffers — double-buffered
    # input + output plus onehot / matmul-result intermediates (~4 KiB/row).
    # Raise v5e's 16 MiB scoped default; stay <= 48 MiB for v7x's 64 MiB VMEM.
    per_row_bytes = 4 * 128 * 8
    vmem_limit = int(min(48 << 20, max(32 << 20, per_row_bytes * tile_n + (4 << 20))))

    out = pl.pallas_call(
        kernel,
        out_shape=jax.ShapeDtypeStruct((n_pad, out_dim), jnp.float32),
        grid_spec=pltpu.PrefetchScalarGridSpec(
            num_scalar_prefetch=0,
            grid=(steps,),
            in_specs=[
                pl.BlockSpec((tile_n, F), lambda i: (i, 0)),
                # Constant index_map: fused table stays VMEM-resident.
                pl.BlockSpec((_K_PAD, sum_dims), lambda i: (0, 0)),
            ],
            out_specs=pl.BlockSpec((tile_n, out_dim), lambda i: (i, 0)),
        ),
        compiler_params=pltpu.CompilerParams(
            dimension_semantics=("parallel",),
            vmem_limit_bytes=vmem_limit),
        cost_estimate=pl.CostEstimate(
            flops=2 * n_pad * _K_PAD * sum_dims,
            transcendentals=0,
            bytes_accessed=(n_pad * (F + out_dim) + _K_PAD * sum_dims) * 4),
    )(x, rhs)
    return out[:N].reshape(B, S, out_dim)


def reference_forward(inputs, tables):
    """Pure-JAX reference replicating the PyTorch forward exactly."""
    B, S, F = inputs.shape
    x = inputs.reshape(B * S, F)
    t_county, t_business, t_product, t_month, t_weekday, t_hour = tables
    county = x[:, 2].astype(jnp.int32)
    business = x[:, 3].astype(jnp.int32)
    product = x[:, 4].astype(jnp.int32)
    month = jnp.maximum(x[:, 7].astype(jnp.int32) - 1, 0)
    hour = x[:, 8].astype(jnp.int32)
    weekday = x[:, 9].astype(jnp.int32)
    cat = jnp.concatenate(
        [jnp.take(t_county, county, axis=0),
         jnp.take(t_business, business, axis=0),
         jnp.take(t_product, product, axis=0),
         jnp.take(t_month, month, axis=0),
         jnp.take(t_weekday, weekday, axis=0),
         jnp.take(t_hour, hour, axis=0)], axis=-1)
    out = jnp.concatenate([x[:, 0:2], x[:, 10:], cat], axis=-1)
    return out.reshape(B, S, -1)


if __name__ == "__main__":
    # Module hyperparameters (small, deterministic).
    num_counties = 16
    num_product_types = 4
    dim_county, dim_business, dim_product = 8, 4, 4
    dim_month, dim_weekday, dim_hour = 4, 4, 8

    key = jax.random.PRNGKey(0)
    keys = jax.random.split(key, 8)

    # Embedding tables (float32, deterministic init as in nn.Embedding).
    tables = (
        jax.random.normal(keys[0], (num_counties, dim_county), jnp.float32),
        jax.random.normal(keys[1], (2, dim_business), jnp.float32),
        jax.random.normal(keys[2], (num_product_types, dim_product), jnp.float32),
        jax.random.normal(keys[3], (12, dim_month), jnp.float32),
        jax.random.normal(keys[4], (7, dim_weekday), jnp.float32),
        jax.random.normal(keys[5], (24, dim_hour), jnp.float32),
    )

    F = 12  # [cont0, cont1, county, business, product, 5, 6, month, hour, weekday, cont10, cont11]

    def make_inputs(seed_key, B, S):
        ks = jax.random.split(seed_key, 7)
        x = jax.random.normal(ks[0], (B, S, F), jnp.float32)
        x = x.at[:, :, 2].set(jax.random.randint(ks[1], (B, S), 0, num_counties).astype(jnp.float32))
        x = x.at[:, :, 3].set(jax.random.randint(ks[2], (B, S), 0, 2).astype(jnp.float32))
        x = x.at[:, :, 4].set(jax.random.randint(ks[3], (B, S), 0, num_product_types).astype(jnp.float32))
        x = x.at[:, :, 7].set(jax.random.randint(ks[4], (B, S), 1, 13).astype(jnp.float32))   # 1..12
        x = x.at[:, :, 8].set(jax.random.randint(ks[5], (B, S), 0, 24).astype(jnp.float32))
        x = x.at[:, :, 9].set(jax.random.randint(ks[6], (B, S), 0, 7).astype(jnp.float32))
        return x

    # Small smoke test (N=16 rows -> forced 2-step grid, exercises passthrough stores).
    B, S = 2, 8
    inputs = make_inputs(keys[6], B, S)
    out = jax.block_until_ready(embedder_forward(inputs, tables))
    ref = reference_forward(inputs, tables)
    out_dim = 2 + (F - 10) + dim_county + dim_business + dim_product + dim_month + dim_weekday + dim_hour
    assert out.shape == (B, S, out_dim)
    assert jnp.allclose(out, ref, atol=1e-5, rtol=1e-5)

    # Multi-tile test: even grid, VMEM-resident fused table, tail padding.
    B2, S2 = 4, 520                      # N = 2080 rows -> 6 tiles of 352 (padded)
    inputs2 = make_inputs(keys[7], B2, S2)
    out2 = jax.block_until_ready(embedder_forward(inputs2, tables, tile_n=512))
    ref2 = reference_forward(inputs2, tables)
    assert jnp.allclose(out2, ref2, atol=1e-5, rtol=1e-5)

    print("KERNEL_OK")
</pallas_src>

<mosaic_0001>
module attributes {stable_mosaic.version = 11 : i64} {
  func.func @embedder_kernel(%arg0: i32, %arg1: memref<8x12xf32, #tpu.memory_space<vmem>>, %arg2: memref<128x32xf32, #tpu.memory_space<vmem>>, %arg3: memref<8x36xf32, #tpu.memory_space<vmem>>) attributes {dimension_semantics = [#tpu.dimension_semantics<parallel>], iteration_bounds = array<i64: 2>, scalar_prefetch = 0 : i64, scratch_operands = 0 : i64, tpu.core_type = #tpu.core_type<tc>, window_params = [{transform_indices = @transform_0, window_bounds = array<i64: 8, 12>}, {pipeline_mode = #tpu.pipeline_mode<synchronous>, transform_indices = @transform_1, window_bounds = array<i64: 128, 32>}, {transform_indices = @transform_2, window_bounds = array<i64: 8, 36>}]} {
    %c0 = arith.constant 0 : index
    %c0_0 = arith.constant 0 : index
    %0 = vector.load %arg1[%c0, %c0_0] : memref<8x12xf32, #tpu.memory_space<vmem>>, vector<8x12xf32>
    %1 = tpu.iota {dimensions = array<i32: 1>} : vector<1x128xi32>
    %2 = vector.extract_strided_slice %0 {offsets = [0, 2], sizes = [8, 1], strides = [1, 1]} : vector<8x12xf32> to vector<8x1xf32>
    %3 = arith.fptosi %2 : vector<8x1xf32> to vector<8x1xi32>
    %c0_i32 = arith.constant 0 : i32
    %c15_i32 = arith.constant 15 : i32
    %4 = vector.broadcast %c0_i32 : i32 to vector<8x1xi32>
    %5 = arith.maxsi %4, %3 : vector<8x1xi32>
    %6 = vector.broadcast %c15_i32 : i32 to vector<8x1xi32>
    %7 = arith.minsi %6, %5 : vector<8x1xi32>
    %c0_i32_1 = arith.constant 0 : i32
    %8 = vector.broadcast %c0_i32_1 : i32 to vector<8x1xi32>
    %9 = arith.addi %7, %8 : vector<8x1xi32>
    %10 = vector.broadcast %1 : vector<1x128xi32> to vector<8x128xi32>
    %11 = vector.broadcast %9 : vector<8x1xi32> to vector<8x128xi32>
    %12 = arith.cmpi eq, %10, %11 : vector<8x128xi32>
    %13 = vector.extract_strided_slice %0 {offsets = [0, 3], sizes = [8, 1], strides = [1, 1]} : vector<8x12xf32> to vector<8x1xf32>
    %14 = arith.fptosi %13 : vector<8x1xf32> to vector<8x1xi32>
    %c0_i32_2 = arith.constant 0 : i32
    %c1_i32 = arith.constant 1 : i32
    %15 = vector.broadcast %c0_i32_2 : i32 to vector<8x1xi32>
    %16 = arith.maxsi %15, %14 : vector<8x1xi32>
    %17 = vector.broadcast %c1_i32 : i32 to vector<8x1xi32>
    %18 = arith.minsi %17, %16 : vector<8x1xi32>
    %c16_i32 = arith.constant 16 : i32
    %19 = vector.broadcast %c16_i32 : i32 to vector<8x1xi32>
    %20 = arith.addi %18, %19 : vector<8x1xi32>
    %21 = vector.broadcast %1 : vector<1x128xi32> to vector<8x128xi32>
    %22 = vector.broadcast %20 : vector<8x1xi32> to vector<8x128xi32>
    %23 = arith.cmpi eq, %21, %22 : vector<8x128xi32>
    %24 = arith.ori %12, %23 : vector<8x128xi1>
    %25 = vector.extract_strided_slice %0 {offsets = [0, 4], sizes = [8, 1], strides = [1, 1]} : vector<8x12xf32> to vector<8x1xf32>
    %26 = arith.fptosi %25 : vector<8x1xf32> to vector<8x1xi32>
    %c0_i32_3 = arith.constant 0 : i32
    %c3_i32 = arith.constant 3 : i32
    %27 = vector.broadcast %c0_i32_3 : i32 to vector<8x1xi32>
    %28 = arith.maxsi %27, %26 : vector<8x1xi32>
    %29 = vector.broadcast %c3_i32 : i32 to vector<8x1xi32>
    %30 = arith.minsi %29, %28 : vector<8x1xi32>
    %c18_i32 = arith.constant 18 : i32
    %31 = vector.broadcast %c18_i32 : i32 to vector<8x1xi32>
    %32 = arith.addi %30, %31 : vector<8x1xi32>
    %33 = vector.broadcast %1 : vector<1x128xi32> to vector<8x128xi32>
    %34 = vector.broadcast %32 : vector<8x1xi32> to vector<8x128xi32>
    %35 = arith.cmpi eq, %33, %34 : vector<8x128xi32>
    %36 = arith.ori %24, %35 : vector<8x128xi1>
    %37 = vector.extract_strided_slice %0 {offsets = [0, 7], sizes = [8, 1], strides = [1, 1]} : vector<8x12xf32> to vector<8x1xf32>
    %38 = arith.fptosi %37 : vector<8x1xf32> to vector<8x1xi32>
    %c1_i32_4 = arith.constant 1 : i32
    %39 = vector.broadcast %c1_i32_4 : i32 to vector<8x1xi32>
    %40 = arith.subi %38, %39 : vector<8x1xi32>
    %c0_i32_5 = arith.constant 0 : i32
    %41 = vector.broadcast %c0_i32_5 : i32 to vector<8x1xi32>
    %42 = arith.maxsi %40, %41 : vector<8x1xi32>
    %c0_i32_6 = arith.constant 0 : i32
    %c11_i32 = arith.constant 11 : i32
    %43 = vector.broadcast %c0_i32_6 : i32 to vector<8x1xi32>
    %44 = arith.maxsi %43, %42 : vector<8x1xi32>
    %45 = vector.broadcast %c11_i32 : i32 to vector<8x1xi32>
    %46 = arith.minsi %45, %44 : vector<8x1xi32>
    %c22_i32 = arith.constant 22 : i32
    %47 = vector.broadcast %c22_i32 : i32 to vector<8x1xi32>
    %48 = arith.addi %46, %47 : vector<8x1xi32>
    %49 = vector.broadcast %1 : vector<1x128xi32> to vector<8x128xi32>
    %50 = vector.broadcast %48 : vector<8x1xi32> to vector<8x128xi32>
    %51 = arith.cmpi eq, %49, %50 : vector<8x128xi32>
    %52 = arith.ori %36, %51 : vector<8x128xi1>
    %53 = vector.extract_strided_slice %0 {offsets = [0, 9], sizes = [8, 1], strides = [1, 1]} : vector<8x12xf32> to vector<8x1xf32>
    %54 = arith.fptosi %53 : vector<8x1xf32> to vector<8x1xi32>
    %c0_i32_7 = arith.constant 0 : i32
    %c6_i32 = arith.constant 6 : i32
    %55 = vector.broadcast %c0_i32_7 : i32 to vector<8x1xi32>
    %56 = arith.maxsi %55, %54 : vector<8x1xi32>
    %57 = vector.broadcast %c6_i32 : i32 to vector<8x1xi32>
    %58 = arith.minsi %57, %56 : vector<8x1xi32>
    %c34_i32 = arith.constant 34 : i32
    %59 = vector.broadcast %c34_i32 : i32 to vector<8x1xi32>
    %60 = arith.addi %58, %59 : vector<8x1xi32>
    %61 = vector.broadcast %1 : vector<1x128xi32> to vector<8x128xi32>
    %62 = vector.broadcast %60 : vector<8x1xi32> to vector<8x128xi32>
    %63 = arith.cmpi eq, %61, %62 : vector<8x128xi32>
    %64 = arith.ori %52, %63 : vector<8x128xi1>
    %65 = vector.extract_strided_slice %0 {offsets = [0, 8], sizes = [8, 1], strides = [1, 1]} : vector<8x12xf32> to vector<8x1xf32>
    %66 = arith.fptosi %65 : vector<8x1xf32> to vector<8x1xi32>
    %c0_i32_8 = arith.constant 0 : i32
    %c23_i32 = arith.constant 23 : i32
    %67 = vector.broadcast %c0_i32_8 : i32 to vector<8x1xi32>
    %68 = arith.maxsi %67, %66 : vector<8x1xi32>
    %69 = vector.broadcast %c23_i32 : i32 to vector<8x1xi32>
    %70 = arith.minsi %69, %68 : vector<8x1xi32>
    %c41_i32 = arith.constant 41 : i32
    %71 = vector.broadcast %c41_i32 : i32 to vector<8x1xi32>
    %72 = arith.addi %70, %71 : vector<8x1xi32>
    %73 = vector.broadcast %1 : vector<1x128xi32> to vector<8x128xi32>
    %74 = vector.broadcast %72 : vector<8x1xi32> to vector<8x128xi32>
    %75 = arith.cmpi eq, %73, %74 : vector<8x128xi32>
    %76 = arith.ori %64, %75 : vector<8x128xi1>
    %77 = arith.extui %76 : vector<8x128xi1> to vector<8x128xi32>
    %78 = arith.sitofp %77 : vector<8x128xi32> to vector<8x128xf32>
    %c0_9 = arith.constant 0 : index
    %c0_10 = arith.constant 0 : index
    %79 = vector.load %arg2[%c0_9, %c0_10] : memref<128x32xf32, #tpu.memory_space<vmem>>, vector<128x32xf32>
    %cst = arith.constant dense<0.000000e+00> : vector<8x32xf32>
    %80 = tpu.matmul %78, %79, %cst {dimension_numbers = #tpu.dot_dimension_numbers<[1], [0], [0], [1], [0, 0, 1, 1], [], []>} : vector<8x128xf32>, vector<128x32xf32>, vector<8x32xf32> -> vector<8x32xf32>
    %81 = vector.extract_strided_slice %0 {offsets = [0, 0], sizes = [8, 2], strides = [1, 1]} : vector<8x12xf32> to vector<8x2xf32>
    %c0_11 = arith.constant 0 : index
    %c0_12 = arith.constant 0 : index
    %82 = vector.load %arg3[%c0_11, %c0_12] : memref<8x36xf32, #tpu.memory_space<vmem>>, vector<8x2xf32>
    tpu.vector_store %arg3[%c0_11, %c0_12], %81 {strides = array<i32>} : memref<8x36xf32, #tpu.memory_space<vmem>>, vector<8x2xf32>,
    %83 = vector.extract_strided_slice %0 {offsets = [0, 10], sizes = [8, 2], strides = [1, 1]} : vector<8x12xf32> to vector<8x2xf32>
    %c0_13 = arith.constant 0 : index
    %c2 = arith.constant 2 : index
    %84 = vector.load %arg3[%c0_13, %c2] : memref<8x36xf32, #tpu.memory_space<vmem>>, vector<8x2xf32>
    tpu.vector_store %arg3[%c0_13, %c2], %83 {strides = array<i32>} : memref<8x36xf32, #tpu.memory_space<vmem>>, vector<8x2xf32>,
    %c0_14 = arith.constant 0 : index
    %c4 = arith.constant 4 : index
    %85 = vector.load %arg3[%c0_14, %c4] : memref<8x36xf32, #tpu.memory_space<vmem>>, vector<8x32xf32>
    tpu.vector_store %arg3[%c0_14, %c4], %80 {strides = array<i32>} : memref<8x36xf32, #tpu.memory_space<vmem>>, vector<8x32xf32>,
    return
  }
  func.func @transform_0(%arg0: i32) -> (i32, i32) {
    %c0_i32 = arith.constant 0 : i32
    %c0_i32_0 = arith.constant 0 : i32
    return %arg0, %c0_i32 : i32, i32
  }
  func.func @transform_1(%arg0: i32) -> (i32, i32) {
    %c0_i32 = arith.constant 0 : i32
    %c0_i32_0 = arith.constant 0 : i32
    %c0_i32_1 = arith.constant 0 : i32
    return %c0_i32, %c0_i32_0 : i32, i32
  }
  func.func @transform_2(%arg0: i32) -> (i32, i32) {
    %c0_i32 = arith.constant 0 : i32
    %c0_i32_0 = arith.constant 0 : i32
    return %arg0, %c0_i32 : i32, i32
  }
}

</mosaic_0001>

<bundles_post_ra>
// kernel: tpu_custom_call.1
= control target key start
LH: loop header
LB: loop body
LE: loop exit
PB: predicated region body
PF: predicated region fallthrough
CT: control target
= control target key end

     0   :  { %7 = vsyncpa [#allocation3], 0  ;;  %s623_s0 = inlined_call_operand.vmem [shape: f32[16,12], index: 0, kind: input, shape index: {}]   ;;  %s624_s1 = inlined_call_operand.vmem [shape: f32[128,32], index: 1, kind: input, shape index: {}]   ;;  %s625_s2 = inlined_call_operand.hbm [shape: f32[16,36], index: 2, kind: output, shape index: {}]  }
   0x1   :  { %9 = vsyncpa [#allocation3 + $0x1], 0  ;;  %s483_s9 = smov 0   ;;  %s485_s10 = smov 0  }
   0x2   :  { %s487_s11 = smov 0   ;;  %s489_s12 = smov 0  }
   0x3 LB: > { %s504_s13 = sadd.s32 4294967295, %s457_s12   ;;  %s323_s14 = sadd.s32 4294967294, %s457_s12   ;;  %s457_s12 = sphi %s489_s12, %s631_s12   ;;  %s453_s11 = sphi %s487_s11, %s630_s11   ;;  %s449_s10 = sphi %s485_s10, %s629_s10   ;;  %s445_s9 = sphi %s483_s9, %s628_s9  }
   0x4   : > { %s508_s15 = sadd.s32 1, %s457_s12   ;;  %s69_s16 = sadd.s32 1, %s453_s11 }
   0x5   : > { %s66_s17 = ssub.s32 %s457_s12, %s508_s15  ;;  %p79_p0 = scmp.ne.s32.totalorder %s453_s11, %s449_s10 }
   0x6   : > { %p67_p1 = scmp.eq.s32.totalorder %s66_s17, 0  ;;  %p80_p2 = scmp.eq.s32.totalorder %s504_s13, 1 }
   0x7   : > { %p85_p3 = scmp.ne.s32.totalorder %s449_s10, %s445_s9  ;;  %p86_p4 = scmp.eq.s32.totalorder %s323_s14, 1 }
   0x8   : > { %s519_s18 = scalar_select %p67_p1, %s453_s11, %s69_s16  }
   0x9   : > { %p521_p5 = por %p80_p2, %p79_p0  ;;  %p525_p6 = por %p86_p4, %p85_p3 }
   0xa   : > { %p326_p7 = scmp.ge.s32.totalorder %s457_s12, 1  ;;  %p114_p8 = scmp.lt.s32.totalorder %s457_s12, 3 }
   0xc   : > { %p115_p9 = pnand %p326_p7, %p114_p8 }
   0xd   : > { %p135_p10 = scmp.lt.s32.totalorder (!%p115_p9), %s504_s13, 1  ;;  %s465_s23 = smov (!%p115_p9), 120  }
   0xe   : > { %118 = sbr.rel (%p115_p9) target bundleno = 384 (0x180), region = 28  ;;  %s132_s21 = sand.u32 (!%p115_p9), 1, %s449_s10  }
   0xf   : > { %s327_s22 = sshll.u32 (!%p115_p9), %s132_s21, 3  ;;  %s467_s24 = smov (!%p115_p9), 4  }
  0x10   : > { %s415_s7 = scalar_lea.hbm (!%p115_p9), %s625_s2, 16 }
  0x13   : > { %v213_v0 = vld [vmem:[%s624_s1 + $0x78] sm:$0xff]  ;;  %v459_v1 = vmov 2   ;;  %v460_v2 = vmov 4   ;;  %v212_v3 = vld [vmem:[%s624_s1 + $0x70] sm:$0xff]  ;;  %s136_s25 = scalar_select %p135_p10, %s504_s13, 1  ;;  %v461_v4 = vmov 9   ;;  %v140_v44 = vlaneseq }
  0x14   : > { %388 = vset.pattern.permute.xlu0 %v459_v1  ;;  %390 = vset.pattern.permute.xlu1 %v460_v2  ;;  %v211_v5 = vld [vmem:[%s624_s1 + $0x68] sm:$0xff]  ;;  %v210_v6 = vld [vmem:[%s624_s1 + $0x60] sm:$0xff]  ;;  %v209_v10 = vld [vmem:[%s624_s1 + $0x58] sm:$0xff]  ;;  %v462_v30 = vmov 3   ;;  %v463_v32 = vmov 7   ;;  %v464_v33 = vmov 8  }
  0x15   : > { %392 = vset.pattern.permute.xlu2 %v461_v4  ;;  %214 = vmatpush.msra.mxu0 %v213_v0  ;;  %s328_s28 = sshll.u32 %s136_s25, 3  ;;  %v208_v12 = vld [vmem:[%s624_s1 + $0x50] sm:$0xff]  ;;  %v207_v14 = vld [vmem:[%s624_s1 + $0x48] sm:$0xff]  ;;  %v206_v17 = vld [vmem:[%s624_s1 + $0x40] sm:$0xff]  ;;  %v141_v46 = vand.u32 127, %v140_v44  ;;  %v466_v50 = vmov 0.0  }
  0x16   : > { %s138_s3 = scalar_lea.vmem %s623_s0, %s328_s28  ;;  %v205_v34 = vld [vmem:[%s624_s1 + $0x38] sm:$0xff]  ;;  %v204_v35 = vld [vmem:[%s624_s1 + $0x30] sm:$0xff]  ;;  %v203_v36 = vld [vmem:[%s624_s1 + $0x28] sm:$0xff]  ;;  %s332_s25 = sshll.u32 %s504_s13, 3 }
  0x17   : > { %215 = vmatpush.msra.mxu0 %v212_v3  ;;  %v548_v7 = vld [vmem:[%s138_s3] sm:$0xff]  ;;  %v201_v38 = vld [vmem:[%s624_s1 + $0x18] sm:$0xff]  ;;  %v200_v39 = vld [vmem:[%s624_s1 + $0x10] sm:$0xff]  ;;  %s259_s28 = scalar_lea.hbm %s625_s2, %s332_s25  ;;  %s249_s3 = scalar_lea.sflag [#allocation3], %s132_s21 }
  0x18   : > { %vm335_vm0 = vcmp.lt.s32.totalorder %v548_v7, 0  ;;  %v336_v8 = vceil.f32 %v548_v7  ;;  %v337_v9 = vfloor.f32 %v548_v7  ;;  %v202_v37 = vld [vmem:[%s624_s1 + $0x20] sm:$0xff]  ;;  %v199_v40 = vld [vmem:[%s624_s1 + $0x8] sm:$0xff]  ;;  %s263_s30 = sshll.u32 %s259_s28, 4  ;;  %s264_s30 = int_to_ptr.hbm [resolvable:$true] %s263_s30 }
  0x19   : > { %216 = vmatpush.msra.mxu0 %v211_v5  ;;  %v198_v41 = vld [vmem:[%s624_s1] sm:$0xff]  ;;  %s409_s4 = sshra.s32 %s264_s30, 4  ;;  %s410_s4 = int_to_ptr.hbm [resolvable:$true] %s409_s4 }
  0x1a   : > { %v338_v11 = vsel %vm335_vm0, %v336_v8, %v337_v9  ;;  %s411_s5 = scalar_lea.hbm %s410_s4, 8  ;;  %p416_p0 = scmp.lt.s32.totalorder %s410_s4, %s625_s2 }
  0x1b   : > { %217 = vmatpush.msra.mxu0 %v210_v6  ;;  %v339_v13 = vcvt.f32.s32 %v338_v11  ;;  %p412_p11 = scmp.ne.s32.totalorder %s410_s4, %s411_s5  ;;  %p417_p1 = scmp.lt.s32.totalorder %s415_s7, %s411_s5 }
  0x1d   : > { %218 = vmatpush.msra.mxu0 %v209_v10  ;;  %vm143_vm1 = vcmp.gt.s32.totalorder %v339_v13, 0  ;;  %v329_v15 = vadd.s32 4294967295, %v339_v13  ;;  %p413_p12 = pnand %p412_p11, %p521_p5  ;;  %p418_p2 = por %p417_p1, %p416_p0 }
  0x1e   : > { %v144_v16 = vsel %vm143_vm1, %v339_v13, 0 }
  0x1f   : > { %219 = vmatpush.msra.mxu0 %v208_v12  ;;  %vm145_vm2 = vcmp.lt.s32.totalorder %v144_v16, 15  ;;  %vm159_vm3 = vcmp.lt.s32.totalorder %v144_v16, 3  ;;  %vm168_vm4 = vcmp.gt.s32.totalorder %v329_v15, 0  ;;  %vm151_vm5 = vcmp.lt.s32.totalorder %v144_v16, 1  ;;  %p414_p13 = pneg %p413_p12 }
  0x20   : > { %v146_v18 = vsel %vm145_vm2, %v144_v16, 15  ;;  %v160_v19 = vsel %vm159_vm3, %v144_v16, 3  ;;  %v169_v20 = vsel %vm168_vm4, %v329_v15, 0  ;;  %vm180_vm7 = vcmp.lt.s32.totalorder %v144_v16, 6 }
  0x21   : > { %220 = vmatpush.msra.mxu0 %v207_v14  ;;  %148 = vperm.xlu0 %388, %v146_v18   ;;  %v161_v21 = vadd.s32 18, %v160_v19  ;;  %vm170_vm6 = vcmp.gt.s32.totalorder %v169_v20, 0  ;;  %v181_v23 = vsel %vm180_vm7, %v144_v16, 6  ;;  %v152_v24 = vsel %vm151_vm5, %v144_v16, 1  ;;  %p419_p3 = pnand %p418_p2, %p414_p13 }
  0x22   : > { %v171_v22 = vsel %vm170_vm6, %v169_v20, 0  ;;  %v182_v25 = vadd.s32 34, %v181_v23  ;;  %vm188_vm9 = vcmp.lt.s32.totalorder %v144_v16, 23  ;;  %v153_v27 = vadd.s32 16, %v152_v24 }
  0x23   : > { %221 = vmatpush.msra.mxu0 %v206_v17  ;;  %163 = vperm.xlu1 %390, %v161_v21   ;;  %vm172_vm8 = vcmp.lt.s32.totalorder %v171_v22, 11  ;;  %v189_v28 = vsel %vm188_vm9, %v144_v16, 23  ;;  %vm234_vm5 = vcmask 15360   ;;  %vm240_vm6 = vcmask 31760  }
  0x24   : > { %v173_v26 = vsel %vm172_vm8, %v171_v22, 11  ;;  %184 = vperm.xlu2 %392, %v182_v25   ;;  %v190_v31 = vadd.s32 41, %v189_v28  ;;  %vm246_vm7 = vcmask 293920  }
  0x25   : > { %v174_v29 = vadd.s32 22, %v173_v26  ;;  %222 = vmatpush.msra.mxu0 %v205_v34 }
  0x27   : > { %223 = vmatpush.msra.mxu0 %v204_v35 }
  0x29   : > { %389 = vset.pattern.permute.xlu0 %v462_v30  ;;  %224 = vmatpush.msra.mxu0 %v203_v36 }
  0x2a   : > { %155 = vperm.xlu0 %389, %v153_v27  }
  0x2b   : > { %391 = vset.pattern.permute.xlu1 %v463_v32  ;;  %225 = vmatpush.msra.mxu0 %v202_v37 }
  0x2c   : > { %176 = vperm.xlu1 %391, %v174_v29   ;;  %393 = vset.pattern.permute.xlu2 %v464_v33 }
  0x2d   : > { %192 = vperm.xlu2 %393, %v190_v31   ;;  %226 = vmatpush.msra.mxu0 %v201_v38 }
  0x2f   : > { %227 = vmatpush.msra.mxu0 %v200_v39 }
  0x31   : > { %228 = vmatpush.msra.mxu0 %v199_v40 }
  0x32   : > { %394 = vset.pattern.permute.xlu0 %v464_v33 }
  0x33   : > { %229 = vmatpush.msra.mxu0 %v198_v41 }
  0x34   : > { %237 = vrot.lane.b32.xlu1 %v548_v7, %s465_s23  ;;  %s134_s23 = scalar_lea.vmem [#allocation2], %s327_s22 }
  0x35   : > { %235 = vst.msk [vmem:[%s134_s23] sm:$0xff] %vm234_vm5, %v548_v7  ;;  %s261_s29 = sshll.u32 %s134_s23, 4  ;;  %s262_s29 = int_to_ptr.vmem [resolvable:$true] %s261_s29 }
  0x7e   : > { %v185_v42 = vpop.permute.xlu2 %184 }
  0x7f   : > { %vm186_vm1 = vcmp.eq.s32.totalorder %v141_v46, %v185_v42 }
  0x87   : > { %v193_v48 = vpop.permute.xlu2 %192 }
  0x88   : > { %vm194_vm0 = vcmp.eq.s32.totalorder %v141_v46, %v193_v48 }
  0x93   : > { %v149_v43 = vpop.permute.xlu0 %148 }
  0x94   : > { %vm150_vm10 = vcmp.eq.s32.totalorder %v141_v46, %v149_v43 }
  0x95   : > { %v164_v45 = vpop.permute.xlu1 %163 }
  0x96   : > { %vm165_vm12 = vcmp.eq.s32.totalorder %v141_v46, %v164_v45 }
  0x9c   : > { %v156_v47 = vpop.permute.xlu0 %155 }
  0x9d   : > { %vm157_vm11 = vcmp.eq.s32.totalorder %v141_v46, %v156_v47 }
  0x9e   : > { %vm158_vm13 = vmor %vm150_vm10, %vm157_vm11  ;;  %v177_v49 = vpop.permute.xlu1 %176 }
  0x9f   : > { %vm166_vm14 = vmor %vm158_vm13, %vm165_vm12  ;;  %vm178_vm15 = vcmp.eq.s32.totalorder %v141_v46, %v177_v49 }
  0xa0   : > { %vm179_vm2 = vmor %vm166_vm14, %vm178_vm15 }
  0xa1   : > { %vm187_vm3 = vmor %vm179_vm2, %vm186_vm1 }
  0xa2   : > { %vm195_vm4 = vmor %vm187_vm3, %vm194_vm0 }
  0xa3   : > { %v330_v51 = vsel %vm195_vm4, 1.0, %v466_v50 }
  0xa4   : > { %230 = vmatmul.f32.vlgmr.msra.gmra.mxu0 %v330_v51 }
  0xa6   : > { %v238_v52 = vpop.permute.xlu1 %237 }
  0xa7   : > { %241 = vst.msk [vmem:[%s134_s23] sm:$0xff] %vm240_vm6, %v238_v52 }
 0x121   : > { %v231_v53 = vpop.f32.mrf.mxu0 }
 0x122   : > { %243 = vrot.lane.b32.xlu2 %v231_v53, %s467_s24 }
 0x17c   : > { %v244_v54 = vpop.permute.xlu2 %243 }
 0x17d   : > { %247 = vst.msk [vmem:[%s134_s23] sm:$0xff] %vm246_vm7, %v244_v54 }
 0x17e   : > { %422 = shalt.err (!%p419_p3)
}
 0x17f   : > { %340 = dma.vmem_to_hbm [thread:$0]  (%p521_p5), %s262_s29, 128, %s264_s30, %s249_s3  }
 0x180 PF: > { %p346_p4 = scmp.ge.s32.totalorder %s457_s12, 2  ;;  %s275_s16 = sand.u32 1, %s445_s9  }
 0x181   : > { %s276_s17 = scalar_lea.sflag [#allocation3], %s275_s16 }
 0x182   : > { %p343_p7 = pnand %p346_p4, %p525_p6 }
 0x184   : > { %p344_p8 = pneg %p343_p7 }
 0x186   : > { %440 = dma.done.wait (%p344_p8), %s276_s17, 128  }
 0x187   : > { %442 = vsyncadd (%p344_p8), %s276_s17, 4294967168  ;;  %p12_p9 = scmp.ge.s32.totalorder %s508_s15, 4   ;;  %s628_s9 = smov %s449_s10 }
 0x188   : > { %s629_s10 = smov %s453_s11  ;;  %s630_s11 = smov %s519_s18 }
 0x189   : > { %s631_s12 = smov %s508_s15  ;;  %14 = sbr.rel (!%p12_p9) target bundleno = 3 (0x3), region = 63 }
 0x18e   :  { %282 = vsyncpa [#allocation3], 1 }
 0x18f   :  { %284 = vsyncpa [#allocation3 + $0x1], 1 }

</bundles_post_ra>
